<compile_context>
chip_gen: v7x
topology: tpu7x:2x2x1
jax: 0.10.0
libtpu: 0.0.40
codegen_flags: <defaults>
</compile_context>

<pallas_src>
import numpy as np
import jax
import jax.numpy as jnp
from jax.experimental import pallas as pl
from jax.experimental.pallas import tpu as pltpu

# ---------------------------------------------------------------------------
# Deterministic stain matrices (same values as the PyTorch __init__).
# ---------------------------------------------------------------------------
RGB_FROM_HED = np.array(
    [[0.65, 0.70, 0.29],
     [0.07, 0.99, 0.11],
     [0.27, 0.57, 0.78]], dtype=np.float64)
HED_FROM_RGB = np.linalg.inv(RGB_FROM_HED)

_LOG_ADJUST = float(np.log(1e-6))        # negative
_NEG_LOG_ADJUST = float(-np.log(1e-6))   # positive

# Trace-time constant folding:
#   stains  = max( (log(x)/log(1e-6)) @ A, 0 ) = max( log(x) @ (A/log(1e-6)), 0 )
#   log_rgb = -(stains * (-log(1e-6))) @ B     = stains @ (B * log(1e-6))
# Stored as plain Python floats (weak-typed) to avoid any f64 promotion noise.
_A_S = [[float(v) for v in row] for row in (HED_FROM_RGB / _LOG_ADJUST)]
_B_S = [[float(v) for v in row] for row in (RGB_FROM_HED * _LOG_ADJUST)]


def _cdiv(a, b):
    return -(-a // b)


def _round_up(a, m):
    return _cdiv(a, m) * m


def _hed_jitter_kernel(params_ref, x_ref, o_ref):
    """params_ref: SMEM (4,) f32 = [alpha_H, alpha_E, beta_H, beta_E]
       x_ref/o_ref: VMEM (3, R_tile, 128) f32 tiles (channel, pixel-row, lane)."""
    alpha_H = params_ref[0]
    alpha_E = params_ref[1]
    beta_H = params_ref[2]
    beta_E = params_ref[3]

    # log of clamped rgb; the 1/log(1e-6) scale is already folded into _A_S.
    lx = jnp.log(jnp.maximum(x_ref[...], 1e-6))     # (3, R_tile, 128)
    r = lx[0]                                       # dense (R_tile, 128)
    g = lx[1]
    b = lx[2]

    # stains (rgb2hed), unrolled 3x3 — far too small for the MXU.
    h = jnp.maximum(r * _A_S[0][0] + g * _A_S[1][0] + b * _A_S[2][0], 0.0)
    e = jnp.maximum(r * _A_S[0][1] + g * _A_S[1][1] + b * _A_S[2][1], 0.0)
    d = jnp.maximum(r * _A_S[0][2] + g * _A_S[1][2] + b * _A_S[2][2], 0.0)

    # hed2rgb with the H/E jitter folded into scalar coefficients
    # (scalar-unit math once per tile, keeps the vector path minimal):
    #   log_rgb[j] = h*(aH*B[0,j]) + e*(aE*B[1,j]) + d*B[2,j]
    #                + (bH*B[0,j] + bE*B[1,j])
    for j in range(3):
        c_h = alpha_H * _B_S[0][j]
        c_e = alpha_E * _B_S[1][j]
        bias = beta_H * _B_S[0][j] + beta_E * _B_S[1][j]
        log_rgb = h * c_h + e * c_e + d * _B_S[2][j] + bias
        # exp() > 0, so only the upper clamp is needed (saves 3 VALU max/px,
        # the binding slot on v7x).
        o_ref[j] = jnp.minimum(jnp.exp(log_rgb), 1.0)


def _choose_tiling(rows, row_tile, min_steps=4):
    """Pick (n_steps, rows_per_step) with n_steps*rows_per_step >= rows,
    rows_per_step a multiple of 8 and <= row_tile.  Minimizes padded rows
    first; among equal padding prefers >= min_steps steps (keeps both
    TensorCores fed on dual-TC chips via the 'parallel' grid axis)."""
    rows = max(rows, 1)
    n_lo = max(1, _cdiv(rows, row_tile))
    n_hi = max(n_lo, min(min_steps, _cdiv(rows, 8)))
    candidates = []
    for n in range(n_lo, n_hi + 1):
        rt = _round_up(_cdiv(rows, n), 8)
        pad = n * rt - rows
        candidates.append((pad, -min(n, min_steps), n, rt))
    _, _, n_steps, rt = min(candidates)
    return n_steps, rt


def hed_jitter(image, target, params, *, row_tile=2048):
    """image: (3, H, W) float32 RGB in [0,1]; target: passed through unchanged.
       params: (4,) float32 = [alpha_H, alpha_E, beta_H, beta_E].
       row_tile: max pixel-rows (of 128 lanes) per grid step (multiple of 8)."""
    C, H, W = image.shape
    assert C == 3, "HEDJitter expects an RGB image (3, H, W)"
    P = H * W

    x = image.reshape(3, P).astype(jnp.float32)     # (channels, pixels)

    # Lane-dense layout: pixels -> (rows, 128).  Balanced tiling keeps the
    # padded row count tiny (<= 8 rows per grid step).
    row_tile = max(8, (int(row_tile) // 8) * 8)
    rows = _cdiv(P, 128)
    n_steps, rt = _choose_tiling(rows, row_tile)
    rows_pad = n_steps * rt
    p_pad = rows_pad * 128

    if p_pad != P:
        # TODO(synk): ragged tails are padded host-side (one extra HBM pass);
        # an in-kernel masked tail would avoid it, but after balanced tiling
        # the pad path only triggers for images whose H*W is not already a
        # multiple of 1024 pixels.
        x = jnp.pad(x, ((0, 0), (0, p_pad - P)), constant_values=1.0)
    x3 = x.reshape(3, rows_pad, 128)

    # ~6 transcendentals (3 log + 3 exp), 24 bytes and ~40 flops per pixel.
    cost = pl.CostEstimate(flops=40 * p_pad,
                           transcendentals=6 * p_pad,
                           bytes_accessed=24 * p_pad)

    out = pl.pallas_call(
        _hed_jitter_kernel,
        out_shape=jax.ShapeDtypeStruct((3, rows_pad, 128), jnp.float32),
        grid=(n_steps,),
        in_specs=[
            pl.BlockSpec(memory_space=pltpu.MemorySpace.SMEM),    # jitter scalars
            pl.BlockSpec((3, rt, 128), lambda i: (0, i, 0)),       # pixel tile
        ],
        out_specs=pl.BlockSpec((3, rt, 128), lambda i: (0, i, 0)),
        compiler_params=pltpu.CompilerParams(
            dimension_semantics=("parallel",),
            vmem_limit_bytes=32 * 1024 * 1024),
        cost_estimate=cost,
    )(params, x3)

    if p_pad != P:
        out = out.reshape(3, p_pad)[:, :P]
    return out.reshape(3, H, W), target


def _reference(image, params):
    """Pure-JAX reference mirroring skimage rgb2hed / hed2rgb."""
    alpha_H, alpha_E, beta_H, beta_E = [params[i] for i in range(4)]
    x = jnp.moveaxis(image, 0, -1)                       # (H, W, 3)
    x = jnp.maximum(x, 1e-6)
    od = jnp.log(x) / _LOG_ADJUST
    stains = jnp.maximum(od @ jnp.asarray(HED_FROM_RGB, jnp.float32), 0.0)
    stains = stains.at[..., 0].set(stains[..., 0] * alpha_H + beta_H)
    stains = stains.at[..., 1].set(stains[..., 1] * alpha_E + beta_E)
    log_rgb = -(stains * _NEG_LOG_ADJUST) @ jnp.asarray(RGB_FROM_HED, jnp.float32)
    rgb = jnp.clip(jnp.exp(log_rgb), 0.0, 1.0)
    return jnp.moveaxis(rgb, -1, 0)


if __name__ == "__main__":
    key = jax.random.PRNGKey(0)
    k1, k2, k3, k_a, k_b = jax.random.split(key, 5)

    # Random jitter coefficients (the module samples these per call).
    # TODO(synk): torch's host-side .uniform_().item() RNG is mirrored with
    # jax.random here; the jitter scalars are a kernel input.
    alpha = jax.random.uniform(k_a, (2,), minval=0.98, maxval=1.02, dtype=jnp.float32)
    beta = jax.random.uniform(k_b, (2,), minval=-0.02, maxval=0.02, dtype=jnp.float32)
    params = jnp.array([alpha[0], alpha[1], beta[0], beta[1]], dtype=jnp.float32)

    cases = [
        (16, 16, k1),    # small aligned image (single grid step, pad path)
        (19, 23, k2),    # odd-sized image (exercises wrapper padding)
        (128, 96, k3),   # multiple of 1024 px (multi-step grid, no padding)
    ]
    for H, W, k in cases:
        image = jax.random.uniform(k, (3, H, W), dtype=jnp.float32)
        target = jnp.zeros((1, H, W), dtype=jnp.int32)
        out_img, out_tgt = hed_jitter(image, target, params)
        out_img = jax.block_until_ready(out_img)
        ref = jax.block_until_ready(_reference(image, params))
        assert out_img.shape == (3, H, W) and out_img.dtype == jnp.float32
        assert bool(jnp.all(out_tgt == target))
        np.testing.assert_allclose(np.asarray(out_img), np.asarray(ref),
                                   rtol=1e-5, atol=1e-5)

    print("KERNEL_OK")
</pallas_src>

<mosaic_0001>
module attributes {stable_mosaic.version = 11 : i64} {
  func.func @_hed_jitter_kernel(%arg0: i32, %arg1: memref<4xf32, #tpu.memory_space<smem>>, %arg2: memref<3x8x128xf32, #tpu.memory_space<vmem>>, %arg3: memref<3x8x128xf32, #tpu.memory_space<vmem>>) attributes {dimension_semantics = [#tpu.dimension_semantics<parallel>], iteration_bounds = array<i64: 1>, scalar_prefetch = 0 : i64, scratch_operands = 0 : i64, tpu.core_type = #tpu.core_type<tc>, window_params = [{transform_indices = @transform_0, window_bounds = array<i64: 4>}, {transform_indices = @transform_1, window_bounds = array<i64: 3, 8, 128>}, {transform_indices = @transform_2, window_bounds = array<i64: 3, 8, 128>}]} {
    %c0 = arith.constant 0 : index
    %0 = memref.load %arg1[%c0] : memref<4xf32, #tpu.memory_space<smem>>
    %c1 = arith.constant 1 : index
    %1 = memref.load %arg1[%c1] : memref<4xf32, #tpu.memory_space<smem>>
    %c2 = arith.constant 2 : index
    %2 = memref.load %arg1[%c2] : memref<4xf32, #tpu.memory_space<smem>>
    %c3 = arith.constant 3 : index
    %3 = memref.load %arg1[%c3] : memref<4xf32, #tpu.memory_space<smem>>
    %c0_0 = arith.constant 0 : index
    %c0_1 = arith.constant 0 : index
    %c0_2 = arith.constant 0 : index
    %4 = vector.load %arg2[%c0_0, %c0_1, %c0_2] : memref<3x8x128xf32, #tpu.memory_space<vmem>>, vector<3x8x128xf32>
    %cst = arith.constant 9.99999997E-7 : f32
    %5 = vector.broadcast %cst : f32 to vector<3x8x128xf32>
    %6 = arith.maximumf %4, %5 : vector<3x8x128xf32>
    %7 = math.log %6 : vector<3x8x128xf32>
    %8 = vector.extract_strided_slice %7 {offsets = [0, 0, 0], sizes = [1, 8, 128], strides = [1, 1, 1]} : vector<3x8x128xf32> to vector<1x8x128xf32>
    %9 = vector.shape_cast %8 : vector<1x8x128xf32> to vector<8x128xf32>
    %10 = vector.extract_strided_slice %7 {offsets = [1, 0, 0], sizes = [1, 8, 128], strides = [1, 1, 1]} : vector<3x8x128xf32> to vector<1x8x128xf32>
    %11 = vector.shape_cast %10 : vector<1x8x128xf32> to vector<8x128xf32>
    %12 = vector.extract_strided_slice %7 {offsets = [2, 0, 0], sizes = [1, 8, 128], strides = [1, 1, 1]} : vector<3x8x128xf32> to vector<1x8x128xf32>
    %13 = vector.shape_cast %12 : vector<1x8x128xf32> to vector<8x128xf32>
    %cst_3 = arith.constant -0.135932922 : f32
    %14 = vector.broadcast %cst_3 : f32 to vector<8x128xf32>
    %15 = arith.mulf %9, %14 : vector<8x128xf32>
    %cst_4 = arith.constant 0.0047705844 : f32
    %16 = vector.broadcast %cst_4 : f32 to vector<8x128xf32>
    %17 = arith.mulf %11, %16 : vector<8x128xf32>
    %18 = arith.addf %15, %17 : vector<8x128xf32>
    %cst_5 = arith.constant 0.0435675085 : f32
    %19 = vector.broadcast %cst_5 : f32 to vector<8x128xf32>
    %20 = arith.mulf %13, %19 : vector<8x128xf32>
    %21 = arith.addf %18, %20 : vector<8x128xf32>
    %cst_6 = arith.constant 0.000000e+00 : f32
    %22 = vector.broadcast %cst_6 : f32 to vector<8x128xf32>
    %23 = arith.maximumf %21, %22 : vector<8x128xf32>
    %cst_7 = arith.constant 0.0729382187 : f32
    %24 = vector.broadcast %cst_7 : f32 to vector<8x128xf32>
    %25 = arith.mulf %9, %24 : vector<8x128xf32>
    %cst_8 = arith.constant -0.0821345224 : f32
    %26 = vector.broadcast %cst_8 : f32 to vector<8x128xf32>
    %27 = arith.mulf %11, %26 : vector<8x128xf32>
    %28 = arith.addf %25, %27 : vector<8x128xf32>
    %cst_9 = arith.constant 0.0347735398 : f32
    %29 = vector.broadcast %cst_9 : f32 to vector<8x128xf32>
    %30 = arith.mulf %13, %29 : vector<8x128xf32>
    %31 = arith.addf %28, %30 : vector<8x128xf32>
    %cst_10 = arith.constant 0.000000e+00 : f32
    %32 = vector.broadcast %cst_10 : f32 to vector<8x128xf32>
    %33 = arith.maximumf %31, %32 : vector<8x128xf32>
    %cst_11 = arith.constant 0.0402530059 : f32
    %34 = vector.broadcast %cst_11 : f32 to vector<8x128xf32>
    %35 = arith.mulf %9, %34 : vector<8x128xf32>
    %cst_12 = arith.constant 0.00980939529 : f32
    %36 = vector.broadcast %cst_12 : f32 to vector<8x128xf32>
    %37 = arith.mulf %11, %36 : vector<8x128xf32>
    %38 = arith.addf %35, %37 : vector<8x128xf32>
    %cst_13 = arith.constant -0.113900103 : f32
    %39 = vector.broadcast %cst_13 : f32 to vector<8x128xf32>
    %40 = arith.mulf %13, %39 : vector<8x128xf32>
    %41 = arith.addf %38, %40 : vector<8x128xf32>
    %cst_14 = arith.constant 0.000000e+00 : f32
    %42 = vector.broadcast %cst_14 : f32 to vector<8x128xf32>
    %43 = arith.maximumf %41, %42 : vector<8x128xf32>
    %cst_15 = arith.constant -8.98008155 : f32
    %44 = arith.mulf %0, %cst_15 : f32
    %cst_16 = arith.constant -0.967085719 : f32
    %45 = arith.mulf %1, %cst_16 : f32
    %cst_17 = arith.constant -8.98008155 : f32
    %46 = arith.mulf %2, %cst_17 : f32
    %cst_18 = arith.constant -0.967085719 : f32
    %47 = arith.mulf %3, %cst_18 : f32
    %48 = arith.addf %46, %47 : f32
    %49 = vector.broadcast %44 : f32 to vector<8x128xf32>
    %50 = arith.mulf %23, %49 : vector<8x128xf32>
    %51 = vector.broadcast %45 : f32 to vector<8x128xf32>
    %52 = arith.mulf %33, %51 : vector<8x128xf32>
    %53 = arith.addf %50, %52 : vector<8x128xf32>
    %cst_19 = arith.constant -3.73018789 : f32
    %54 = vector.broadcast %cst_19 : f32 to vector<8x128xf32>
    %55 = arith.mulf %43, %54 : vector<8x128xf32>
    %56 = arith.addf %53, %55 : vector<8x128xf32>
    %57 = vector.broadcast %48 : f32 to vector<8x128xf32>
    %58 = arith.addf %56, %57 : vector<8x128xf32>
    %59 = math.exp %58 : vector<8x128xf32>
    %cst_20 = arith.constant 1.000000e+00 : f32
    %60 = vector.broadcast %cst_20 : f32 to vector<8x128xf32>
    %61 = arith.minimumf %59, %60 : vector<8x128xf32>
    %c0_21 = arith.constant 0 : index
    %c0_22 = arith.constant 0 : index
    %c0_23 = arith.constant 0 : index
    %62 = vector.load %arg3[%c0_21, %c0_22, %c0_23] : memref<3x8x128xf32, #tpu.memory_space<vmem>>, vector<1x8x128xf32>
    %63 = vector.shape_cast %62 : vector<1x8x128xf32> to vector<8x128xf32>
    %64 = vector.shape_cast %61 : vector<8x128xf32> to vector<1x8x128xf32>
    tpu.vector_store %arg3[%c0_21, %c0_22, %c0_23], %64 {strides = array<i32>} : memref<3x8x128xf32, #tpu.memory_space<vmem>>, vector<1x8x128xf32>,
    %cst_24 = arith.constant -9.67085742 : f32
    %65 = arith.mulf %0, %cst_24 : f32
    %cst_25 = arith.constant -13.6773558 : f32
    %66 = arith.mulf %1, %cst_25 : f32
    %cst_26 = arith.constant -9.67085742 : f32
    %67 = arith.mulf %2, %cst_26 : f32
    %cst_27 = arith.constant -13.6773558 : f32
    %68 = arith.mulf %3, %cst_27 : f32
    %69 = arith.addf %67, %68 : f32
    %70 = vector.broadcast %65 : f32 to vector<8x128xf32>
    %71 = arith.mulf %23, %70 : vector<8x128xf32>
    %72 = vector.broadcast %66 : f32 to vector<8x128xf32>
    %73 = arith.mulf %33, %72 : vector<8x128xf32>
    %74 = arith.addf %71, %73 : vector<8x128xf32>
    %cst_28 = arith.constant -7.87484121 : f32
    %75 = vector.broadcast %cst_28 : f32 to vector<8x128xf32>
    %76 = arith.mulf %43, %75 : vector<8x128xf32>
    %77 = arith.addf %74, %76 : vector<8x128xf32>
    %78 = vector.broadcast %69 : f32 to vector<8x128xf32>
    %79 = arith.addf %77, %78 : vector<8x128xf32>
    %80 = math.exp %79 : vector<8x128xf32>
    %cst_29 = arith.constant 1.000000e+00 : f32
    %81 = vector.broadcast %cst_29 : f32 to vector<8x128xf32>
    %82 = arith.minimumf %80, %81 : vector<8x128xf32>
    %c1_30 = arith.constant 1 : index
    %c0_31 = arith.constant 0 : index
    %c0_32 = arith.constant 0 : index
    %83 = vector.load %arg3[%c1_30, %c0_31, %c0_32] : memref<3x8x128xf32, #tpu.memory_space<vmem>>, vector<1x8x128xf32>
    %84 = vector.shape_cast %83 : vector<1x8x128xf32> to vector<8x128xf32>
    %85 = vector.shape_cast %82 : vector<8x128xf32> to vector<1x8x128xf32>
    tpu.vector_store %arg3[%c1_30, %c0_31, %c0_32], %85 {strides = array<i32>} : memref<3x8x128xf32, #tpu.memory_space<vmem>>, vector<1x8x128xf32>,
    %cst_33 = arith.constant -4.00649786 : f32
    %86 = arith.mulf %0, %cst_33 : f32
    %cst_34 = arith.constant -1.51970613 : f32
    %87 = arith.mulf %1, %cst_34 : f32
    %cst_35 = arith.constant -4.00649786 : f32
    %88 = arith.mulf %2, %cst_35 : f32
    %cst_36 = arith.constant -1.51970613 : f32
    %89 = arith.mulf %3, %cst_36 : f32
    %90 = arith.addf %88, %89 : f32
    %91 = vector.broadcast %86 : f32 to vector<8x128xf32>
    %92 = arith.mulf %23, %91 : vector<8x128xf32>
    %93 = vector.broadcast %87 : f32 to vector<8x128xf32>
    %94 = arith.mulf %33, %93 : vector<8x128xf32>
    %95 = arith.addf %92, %94 : vector<8x128xf32>
    %cst_37 = arith.constant -10.7760983 : f32
    %96 = vector.broadcast %cst_37 : f32 to vector<8x128xf32>
    %97 = arith.mulf %43, %96 : vector<8x128xf32>
    %98 = arith.addf %95, %97 : vector<8x128xf32>
    %99 = vector.broadcast %90 : f32 to vector<8x128xf32>
    %100 = arith.addf %98, %99 : vector<8x128xf32>
    %101 = math.exp %100 : vector<8x128xf32>
    %cst_38 = arith.constant 1.000000e+00 : f32
    %102 = vector.broadcast %cst_38 : f32 to vector<8x128xf32>
    %103 = arith.minimumf %101, %102 : vector<8x128xf32>
    %c2_39 = arith.constant 2 : index
    %c0_40 = arith.constant 0 : index
    %c0_41 = arith.constant 0 : index
    %104 = vector.load %arg3[%c2_39, %c0_40, %c0_41] : memref<3x8x128xf32, #tpu.memory_space<vmem>>, vector<1x8x128xf32>
    %105 = vector.shape_cast %104 : vector<1x8x128xf32> to vector<8x128xf32>
    %106 = vector.shape_cast %103 : vector<8x128xf32> to vector<1x8x128xf32>
    tpu.vector_store %arg3[%c2_39, %c0_40, %c0_41], %106 {strides = array<i32>} : memref<3x8x128xf32, #tpu.memory_space<vmem>>, vector<1x8x128xf32>,
    return
  }
  func.func @transform_0(%arg0: i32) -> i32 {
    %c0_i32 = arith.constant 0 : i32
    %c0_i32_0 = arith.constant 0 : i32
    return %c0_i32 : i32
  }
  func.func @transform_1(%arg0: i32) -> (i32, i32, i32) {
    %c0_i32 = arith.constant 0 : i32
    %c0_i32_0 = arith.constant 0 : i32
    %c0_i32_1 = arith.constant 0 : i32
    return %c0_i32, %arg0, %c0_i32_0 : i32, i32, i32
  }
  func.func @transform_2(%arg0: i32) -> (i32, i32, i32) {
    %c0_i32 = arith.constant 0 : i32
    %c0_i32_0 = arith.constant 0 : i32
    %c0_i32_1 = arith.constant 0 : i32
    return %c0_i32, %arg0, %c0_i32_0 : i32, i32, i32
  }
}

</mosaic_0001>

<bundles_post_ra>
// kernel: tpu_custom_call.1
= control target key start
LH: loop header
LB: loop body
LE: loop exit
PB: predicated region body
PF: predicated region fallthrough
CT: control target
= control target key end

     0   :  { %7 = vsyncpa [#allocation5], 0  ;;  %s323_s0 = inlined_call_operand.hbm [shape: f32[4], index: 0, kind: input, shape index: {}]   ;;  %s324_s1 = inlined_call_operand.hbm [shape: f32[3,8,128], index: 1, kind: input, shape index: {}]   ;;  %s325_s2 = inlined_call_operand.hbm [shape: f32[3,8,128], index: 2, kind: output, shape index: {}]  }
   0x1   :  { %8 = vsyncpa [#allocation3], 0 }
   0x2   :  { %9 = vsyncpa [#allocation4], 0  ;;  %s165_s11 = scalar_lea.hbm %s323_s0, 16 }
   0x3   :  { %p166_p0 = scmp.ne.s32.totalorder %s323_s0, %s165_s11  ;;  %p169_p1 = scmp.lt.u32.totalorder %s165_s11, %s323_s0 }
   0x5   :  { %p171_p2 = pnand %p169_p1, %p166_p0 }
   0x7   :  { %174 = shalt.err (!%p171_p2)
}
   0x8   :  { %s225_s16 = smov [#allocation2]   ;;  %s226_s19 = smov [#allocation6]  }
   0x9   :  { %17 = dma.hbm_to_smem %s323_s0, 16, %s225_s16, [#allocation5]  }
   0xa   :  { %s23_s20 = sshll.u32 %s226_s19, 4  ;;  %s175_s23 = scalar_lea.hbm %s324_s1, 384  ;;  %s24_s20 = int_to_ptr.vmem [resolvable:$true] %s23_s20 }
   0xb   :  { %p176_p3 = scmp.ne.s32.totalorder %s324_s1, %s175_s23  ;;  %p179_p4 = scmp.lt.u32.totalorder %s175_s23, %s324_s1 }
   0xd   :  { %p181_p5 = pnand %p179_p4, %p176_p3 }
   0xf   :  { %184 = shalt.err (!%p181_p5)
}
  0x10   :  { %s185_s28 = scalar_lea.vmem %s24_s20, 384  ;;  %p190_p7 = scmp.lt.s32.totalorder %s24_s20, %s24_s20 }
  0x11   :  { %p186_p6 = scmp.ne.s32.totalorder %s24_s20, %s185_s28  ;;  %p191_p8 = scmp.lt.s32.totalorder %s185_s28, %s185_s28 }
  0x13   :  { %p192_p9 = por %p191_p8, %p190_p7 }
  0x15   :  { %p193_p10 = pnand %p192_p9, %p186_p6 }
  0x17   :  { %196 = shalt.err (!%p193_p10)
}
  0x18   :  { %s227_s0 = smov 128   ;;  %s228_s29 = smov 8  }
  0x19   :  { %29 = dma.hbm_to_vmem [thread:$0]  %s324_s1, 384, %s24_s20, [#allocation3], %s227_s0, %s227_s0, %s228_s29  }
  0x1a   :  { %219 = dma.done.wait [#allocation5], 16  }
  0x1b   :  { %220 = vsyncadd [#allocation5], 4294967280 }
  0x1c   :  { %221 = dma.done.wait [#allocation3], 384  }
  0x1d   :  { %222 = vsyncadd [#allocation3], 4294966912 }
  0x1e   :  { %36 = sfence }
  0x1f   :  { %s272_s4 = sld [smem:[#allocation2]]  ;;  %v41_v0 = vld [vmem:[#allocation6] sm:$0xff]  ;;  %v42_v1 = vld [vmem:[#allocation6 + $0x8] sm:$0xff]  ;;  %s274_s5 = sld [smem:[#allocation2 + $0x1]]  ;;  %v43_v2 = vld [vmem:[#allocation6 + $0x10] sm:$0xff] }
  0x20   :  { %s276_s6 = sld [smem:[#allocation2 + $0x2]]  ;;  %v44_v3 = vmax.f32 %v41_v0, 1e-06  ;;  %v45_v4 = vmax.f32 %v42_v1, 1e-06  ;;  %s278_s1 = sld [smem:[#allocation2 + $0x3]] }
  0x21   :  { %v46_v5 = vmax.f32 %v43_v2, 1e-06  ;;  %s229_s22 = smov [#allocation7]  }
  0x22   :  { %153 = vlog2.f32 %v44_v3  ;;  %s132_s23 = sshll.u32 %s229_s22, 4  ;;  %s133_s23 = int_to_ptr.vmem [resolvable:$true] %s132_s23 }
  0x23   :  { %155 = vlog2.f32 %v45_v4  ;;  %s197_s24 = scalar_lea.vmem %s133_s23, 384  ;;  %p202_p12 = scmp.lt.s32.totalorder %s133_s23, %s133_s23 }
  0x24   :  { %157 = vlog2.f32 %v46_v5  ;;  %p198_p11 = scmp.ne.s32.totalorder %s133_s23, %s197_s24  ;;  %p203_p13 = scmp.lt.s32.totalorder %s197_s24, %s197_s24 }
  0x25   :  { %s71_s7 = smul.f32 -8.980082, %s272_s4 }
  0x26   :  { %s72_s8 = smul.f32 -0.9670857, %s274_s5  ;;  %p204_p0 = por %p203_p13, %p202_p12 }
  0x27   :  { %s73_s9 = smul.f32 -8.980082, %s276_s6  ;;  %v76_v26 = vstv %s71_s7 }
  0x28   :  { %s74_s10 = smul.f32 -0.9670857, %s278_s1  ;;  %v78_v28 = vstv %s72_s8  ;;  %p205_p1 = pnand %p204_p0, %p198_p11 }
  0x29   :  { %s89_s11 = smul.f32 -9.670857, %s272_s4 }
  0x2a   :  { %s90_s12 = smul.f32 -13.677356, %s274_s5  ;;  %s75_s19 = sadd.f32 %s74_s10, %s73_s9 }
  0x2b   :  { %s91_s13 = smul.f32 -9.670857, %s276_s6  ;;  %v94_v29 = vstv %s89_s11 }
  0x2c   :  { %v154_v6 = vpop.eup %153  ;;  %s92_s14 = smul.f32 -13.677356, %s278_s1  ;;  %v96_v30 = vstv %s90_s12  ;;  %v83_v47 = vstv %s75_s19 }
  0x2d   :  { %v156_v7 = vpop.eup %155  ;;  %v48_v8 = vmul.f32 0.6931472, %v154_v6  ;;  %s108_s15 = smul.f32 -4.006498, %s272_s4 }
  0x2e   :  { %v158_v9 = vpop.eup %157  ;;  %v50_v10 = vmul.f32 0.6931472, %v156_v7  ;;  %s109_s16 = smul.f32 -1.5197061, %s274_s5  ;;  %s93_s20 = sadd.f32 %s92_s14, %s91_s13 }
  0x2f   :  { %v52_v11 = vmul.f32 0.6931472, %v158_v9  ;;  %v53_v12 = vmul.f32 -0.13593292, %v48_v8  ;;  %v59_v13 = vmul.f32 0.07293822, %v48_v8  ;;  %v113_v33 = vstv %s108_s15 }
  0x30   :  { %v54_v14 = vmul.f32 0.0047705844, %v50_v10  ;;  %v60_v15 = vmul.f32 -0.08213452, %v50_v10  ;;  %v65_v16 = vmul.f32 0.040253006, %v48_v8  ;;  %v115_v34 = vstv %s109_s16 }
  0x31   :  { %v56_v17 = vmul.f32 0.04356751, %v52_v11  ;;  %v62_v18 = vmul.f32 0.03477354, %v52_v11  ;;  %v66_v19 = vmul.f32 0.009809395, %v50_v10  ;;  %v101_v48 = vstv %s93_s20 }
  0x32   :  { %v55_v20 = vadd.f32 %v54_v14, %v53_v12  ;;  %v61_v21 = vadd.f32 %v60_v15, %v59_v13  ;;  %v68_v22 = vmul.f32 -0.1139001, %v52_v11  ;;  %s110_s17 = smul.f32 -4.006498, %s276_s6 }
  0x33   :  { %v67_v23 = vadd.f32 %v66_v19, %v65_v16  ;;  %s111_s18 = smul.f32 -1.5197061, %s278_s1 }
  0x34   :  { %v57_v24 = vadd.f32 %v56_v17, %v55_v20  ;;  %v63_v25 = vadd.f32 %v62_v18, %v61_v21 }
  0x35   :  { %v69_v27 = vadd.f32 %v68_v22, %v67_v23  ;;  %s112_s21 = sadd.f32 %s111_s18, %s110_s17 }
  0x36   :  { %v58_v31 = vmax.f32 %v57_v24, 0.0  ;;  %v64_v32 = vmax.f32 %v63_v25, 0.0 }
  0x37   :  { %v70_v35 = vmax.f32 %v69_v27, 0.0  ;;  %v120_v52 = vstv %s112_s21 }
  0x38   :  { %v77_v36 = vmul.f32 %v76_v26, %v58_v31  ;;  %v79_v37 = vmul.f32 %v78_v28, %v64_v32  ;;  %v95_v38 = vmul.f32 %v94_v29, %v58_v31  ;;  %v97_v39 = vmul.f32 %v96_v30, %v64_v32 }
  0x39   :  { %v81_v40 = vmul.f32 -3.730188, %v70_v35  ;;  %v99_v41 = vmul.f32 -7.874841, %v70_v35  ;;  %v114_v42 = vmul.f32 %v113_v33, %v58_v31  ;;  %v116_v43 = vmul.f32 %v115_v34, %v64_v32 }
  0x3a   :  { %v80_v44 = vadd.f32 %v79_v37, %v77_v36  ;;  %v98_v45 = vadd.f32 %v97_v39, %v95_v38  ;;  %v118_v46 = vmul.f32 -10.776098, %v70_v35 }
  0x3b   :  { %v117_v49 = vadd.f32 %v116_v43, %v114_v42 }
  0x3c   :  { %v82_v50 = vadd.f32 %v81_v40, %v80_v44  ;;  %v100_v51 = vadd.f32 %v99_v41, %v98_v45 }
  0x3d   :  { %v119_v53 = vadd.f32 %v118_v46, %v117_v49 }
  0x3e   :  { %v84_v54 = vadd.f32 %v83_v47, %v82_v50  ;;  %v102_v55 = vadd.f32 %v101_v48, %v100_v51 }
  0x3f   :  { %v121_v56 = vadd.f32 %v120_v52, %v119_v53 }
  0x40   :  { %v85_v57 = vmul.f32 1.442695, %v84_v54  ;;  %v103_v58 = vmul.f32 1.442695, %v102_v55 }
  0x41   :  { %v122_v59 = vmul.f32 1.442695, %v121_v56 }
  0x42   :  { %159 = vpow2.f32 %v85_v57 }
  0x43   :  { %161 = vpow2.f32 %v103_v58 }
  0x44   :  { %163 = vpow2.f32 %v122_v59 }
  0x4c   :  { %v160_v60 = vpop.eup %159 }
  0x4d   :  { %v162_v61 = vpop.eup %161  ;;  %v87_v62 = vmin.f32 %v160_v60, 1.0 }
  0x4e   :  { %v164_v63 = vpop.eup %163  ;;  %v105_v0 = vmin.f32 %v162_v61, 1.0 }
  0x4f   :  { %88 = vst [vmem:[#allocation7] sm:$0xff] %v87_v62  ;;  %v124_v1 = vmin.f32 %v164_v63, 1.0 }
  0x50   :  { %107 = vst [vmem:[#allocation7 + $0x8] sm:$0xff] %v105_v0 }
  0x51   :  { %126 = vst [vmem:[#allocation7 + $0x10] sm:$0xff] %v124_v1 }
  0x52   :  { %208 = shalt.err (!%p205_p1)
}
  0x53   :  { %s209_s27 = scalar_lea.hbm %s325_s2, 384 }
  0x54   :  { %p210_p2 = scmp.ne.s32.totalorder %s325_s2, %s209_s27  ;;  %p213_p3 = scmp.lt.u32.totalorder %s209_s27, %s325_s2 }
  0x56   :  { %p215_p4 = pnand %p213_p3, %p210_p2 }
  0x58   :  { %218 = shalt.err (!%p215_p4)
}
  0x59   :  { %138 = dma.vmem_to_hbm [thread:$0]  %s133_s23, 384, %s325_s2, [#allocation4], %s227_s0, %s227_s0, %s228_s29  }
  0x5a   :  { %223 = dma.done.wait [#allocation4], 384  }
  0x5b   :  { %224 = vsyncadd [#allocation4], 4294966912 }
  0x5c   :  { %142 = vsyncpa [#allocation3], 1 }
  0x5d   :  { %143 = vsyncpa [#allocation4], 1 }
  0x5e   :  { %144 = vsyncpa [#allocation5], 1 }

</bundles_post_ra>
